<compile_context>
chip_gen: v7x
topology: tpu7x:2x2x1
jax: 0.10.0
libtpu: 0.0.40
codegen_flags: <defaults>
</compile_context>

<pallas_src>
import functools
import math

import jax
import jax.numpy as jnp
from jax.experimental import pallas as pl
from jax.experimental.pallas import tpu as pltpu


def _conv1d_gn_mish_kernel(x_ref, w_ref, b_ref, gamma_ref, beta_ref,
                           gt_ref, g_ref, o_ref, sum_ref, sq_ref,
                           *, b_tile, K, L_out, eps, cpg):
    # x_ref:     (b_tile, L_pad, C_in)   bf16, zero-padded along L
    # w_ref:     (K, C_in, C_out)        bf16 conv taps
    # b_ref/gamma_ref/beta_ref: (1, C_out) f32
    # gt_ref:    (C_out, G) f32   channel -> group membership
    # g_ref:     (G, C_out) f32   group   -> channel broadcast
    # o_ref:     (b_tile, L_out, C_out) f32
    # sum_ref/sq_ref: (b_tile, C_out) f32 scratch (per-channel sums)

    # ---- Pass 1: Conv1d (K shifted-window matmuls, lane-dense N=C_out) ----
    for bi in range(b_tile):
        acc = jnp.dot(x_ref[bi, 0:L_out, :], w_ref[0],
                      preferred_element_type=jnp.float32)
        for t in range(1, K):
            acc = acc + jnp.dot(x_ref[bi, t:t + L_out, :], w_ref[t],
                                preferred_element_type=jnp.float32)
        acc = acc + b_ref[...]                       # (L_out, C_out)
        o_ref[bi] = acc                              # stash pre-norm acts
        sum_ref[bi:bi + 1, :] = jnp.sum(acc, axis=0, keepdims=True)
        sq_ref[bi:bi + 1, :] = jnp.sum(acc * acc, axis=0, keepdims=True)

    # ---- GroupNorm statistics for the whole batch tile at once ----
    inv_n = 1.0 / float(cpg * L_out)
    gsum = jnp.dot(sum_ref[...], gt_ref[...],
                   preferred_element_type=jnp.float32)        # (b_tile, G)
    gsq = jnp.dot(sq_ref[...], gt_ref[...],
                  preferred_element_type=jnp.float32)         # (b_tile, G)
    mean_g = gsum * inv_n
    var_g = jnp.maximum(gsq * inv_n - mean_g * mean_g, 0.0)   # clamp >= 0
    inv_g = jax.lax.rsqrt(var_g + eps)
    mean_c = jnp.dot(mean_g, g_ref[...],
                     preferred_element_type=jnp.float32)      # (b_tile, C_out)
    inv_c = jnp.dot(inv_g, g_ref[...],
                    preferred_element_type=jnp.float32)       # (b_tile, C_out)
    scale = inv_c * gamma_ref[...]                            # fused affine
    shift = beta_ref[...] - mean_c * scale

    # ---- Pass 2: normalize (1 mul + 1 add) + Mish (1 exp + 1 approx recip) --
    for bi in range(b_tile):
        y = o_ref[bi] * scale[bi:bi + 1, :] + shift[bi:bi + 1, :]
        e = jnp.exp(-jnp.abs(y))                 # e = exp(-|y|) in (0, 1]
        e2 = e * e
        pos = y >= 0.0
        # tanh(softplus(y)):
        #   y >= 0: (1 + 2e) / (1 + 2e + 2e^2)
        #   y <  0: (e^2 + 2e) / (e^2 + 2e + 2)
        num = jnp.where(pos, 1.0 + 2.0 * e, e2 + 2.0 * e)
        den = num + jnp.where(pos, 2.0 * e2, 2.0)
        o_ref[bi] = (y * num * pl.reciprocal(den, approx=True)).astype(
            o_ref.dtype)


def conv1d_block(x, w, b, gamma, beta, n_groups, eps=1e-5):
    """x: (B, C_in, L); w: (C_out, C_in, K); b/gamma/beta: (C_out,)."""
    B, C_in, L = x.shape
    C_out, C_in_w, K = w.shape
    assert C_in_w == C_in
    assert C_out % n_groups == 0
    pad = K // 2
    L_out = L + 2 * pad - K + 1
    L_pad = L + 2 * pad
    cpg = C_out // n_groups

    # Batch-tile selection: aim for ~128 rows of MXU work per grid step, but
    # keep >= 2 grid steps when possible so v7x megacore can split the axis.
    target_rows = 128
    b_tile = max(1, min(B, -(-target_rows // max(1, L_out))))
    if B >= 2:
        b_tile = min(b_tile, max(1, B // 2))
    nb = -(-B // b_tile)
    B_pad = nb * b_tile

    # Layout plumbing: NCL -> NLC (lane-dense C_out output), bf16 MXU inputs.
    # Conv zero-padding + batch padding are folded into one pad on bf16 data.
    x_nlc = jnp.transpose(x, (0, 2, 1)).astype(jnp.bfloat16)   # (B, L, C_in)
    x_p = jnp.pad(x_nlc, ((0, B_pad - B), (pad, pad), (0, 0)))
    w_k = jnp.transpose(w, (2, 1, 0)).astype(jnp.bfloat16)     # (K, C_in, C_out)
    b2 = b.reshape(1, C_out).astype(jnp.float32)
    gamma2 = gamma.reshape(1, C_out).astype(jnp.float32)
    beta2 = beta.reshape(1, C_out).astype(jnp.float32)
    grp_ids = jnp.arange(C_out) // cpg
    g_mat = (grp_ids[None, :] == jnp.arange(n_groups)[:, None]
             ).astype(jnp.float32)                             # (G, C_out)
    g_t = g_mat.T                                              # (C_out, G)

    kernel = functools.partial(_conv1d_gn_mish_kernel, b_tile=b_tile, K=K,
                               L_out=L_out, eps=eps, cpg=cpg)

    out_nlc = pl.pallas_call(
        kernel,
        out_shape=jax.ShapeDtypeStruct((B_pad, L_out, C_out), jnp.float32),
        grid_spec=pltpu.PrefetchScalarGridSpec(
            num_scalar_prefetch=0,
            grid=(nb,),
            in_specs=[
                pl.BlockSpec((b_tile, L_pad, C_in), lambda i: (i, 0, 0)),
                pl.BlockSpec((K, C_in, C_out), lambda i: (0, 0, 0)),
                pl.BlockSpec((1, C_out), lambda i: (0, 0)),
                pl.BlockSpec((1, C_out), lambda i: (0, 0)),
                pl.BlockSpec((1, C_out), lambda i: (0, 0)),
                pl.BlockSpec((C_out, n_groups), lambda i: (0, 0)),
                pl.BlockSpec((n_groups, C_out), lambda i: (0, 0)),
            ],
            out_specs=pl.BlockSpec((b_tile, L_out, C_out), lambda i: (i, 0, 0)),
            scratch_shapes=[pltpu.VMEM((b_tile, C_out), jnp.float32),
                            pltpu.VMEM((b_tile, C_out), jnp.float32)],
        ),
        compiler_params=pltpu.CompilerParams(
            dimension_semantics=("parallel",),
            vmem_limit_bytes=32 * 1024 * 1024),
    )(x_p, w_k, b2, gamma2, beta2, g_t, g_mat)

    # Back to PyTorch NCL layout, drop batch padding.
    return jnp.transpose(out_nlc[:B], (0, 2, 1))


def _reference(x, w, b, gamma, beta, n_groups, eps=1e-5):
    """Pure-JAX reference matching PyTorch Conv1d+GroupNorm+Mish semantics."""
    pad = w.shape[2] // 2
    y = jax.lax.conv_general_dilated(
        x, w, window_strides=(1,), padding=[(pad, pad)],
        dimension_numbers=("NCH", "OIH", "NCH"))
    y = y + b[None, :, None]
    B, C, L = y.shape
    yg = y.reshape(B, n_groups, -1)
    mean = yg.mean(axis=2, keepdims=True)
    var = yg.var(axis=2, keepdims=True)   # biased, like PyTorch GroupNorm
    yn = ((yg - mean) / jnp.sqrt(var + eps)).reshape(B, C, L)
    yn = yn * gamma[None, :, None] + beta[None, :, None]
    return yn * jnp.tanh(jax.nn.softplus(yn))


if __name__ == "__main__":
    B, C_in, C_out, L, K, n_groups = 2, 4, 16, 16, 3, 8

    key = jax.random.PRNGKey(0)
    k1, k2, k3, k4, k5 = jax.random.split(key, 5)
    x = jax.random.normal(k1, (B, C_in, L), jnp.float32)

    # Deterministic parameter init mirroring nn.Conv1d default fan-in bound.
    fan_in = C_in * K
    bound = 1.0 / math.sqrt(fan_in)
    w = jax.random.uniform(k2, (C_out, C_in, K), jnp.float32, -bound, bound)
    b = jax.random.uniform(k3, (C_out,), jnp.float32, -bound, bound)
    # GroupNorm affine params (defaults are ones/zeros; perturb for coverage).
    gamma = 1.0 + 0.1 * jax.random.normal(k4, (C_out,), jnp.float32)
    beta = 0.1 * jax.random.normal(k5, (C_out,), jnp.float32)

    out = conv1d_block(x, w, b, gamma, beta, n_groups)
    out = jax.block_until_ready(out)

    ref = _reference(x, w, b, gamma, beta, n_groups)
    assert out.shape == (B, C_out, L), out.shape
    max_err = float(jnp.max(jnp.abs(out - ref)))
    # Tolerance loosened vs the f32 reference because the conv MXU operands
    # are fed in bf16 (accumulation and GroupNorm stats stay f32).
    assert jnp.allclose(out, ref, atol=5e-2, rtol=5e-2), max_err

    print("KERNEL_OK")
</pallas_src>

<mosaic_0001>
module attributes {stable_mosaic.version = 11 : i64} {
  func.func @_conv1d_gn_mish_kernel(%arg0: i32, %arg1: memref<1x18x4xbf16, #tpu.memory_space<vmem>>, %arg2: memref<3x4x16xbf16, #tpu.memory_space<vmem>>, %arg3: memref<1x16xf32, #tpu.memory_space<vmem>>, %arg4: memref<1x16xf32, #tpu.memory_space<vmem>>, %arg5: memref<1x16xf32, #tpu.memory_space<vmem>>, %arg6: memref<16x8xf32, #tpu.memory_space<vmem>>, %arg7: memref<8x16xf32, #tpu.memory_space<vmem>>, %arg8: memref<1x16x16xf32, #tpu.memory_space<vmem>>, %arg9: memref<1x16xf32, #tpu.memory_space<vmem>>, %arg10: memref<1x16xf32, #tpu.memory_space<vmem>>) attributes {dimension_semantics = [#tpu.dimension_semantics<parallel>], iteration_bounds = array<i64: 2>, scalar_prefetch = 0 : i64, scratch_operands = 2 : i64, tpu.core_type = #tpu.core_type<tc>, window_params = [{transform_indices = @transform_0, window_bounds = array<i64: 1, 18, 4>}, {pipeline_mode = #tpu.pipeline_mode<synchronous>, transform_indices = @transform_1, window_bounds = array<i64: 3, 4, 16>}, {pipeline_mode = #tpu.pipeline_mode<synchronous>, transform_indices = @transform_2, window_bounds = array<i64: 1, 16>}, {pipeline_mode = #tpu.pipeline_mode<synchronous>, transform_indices = @transform_3, window_bounds = array<i64: 1, 16>}, {pipeline_mode = #tpu.pipeline_mode<synchronous>, transform_indices = @transform_4, window_bounds = array<i64: 1, 16>}, {pipeline_mode = #tpu.pipeline_mode<synchronous>, transform_indices = @transform_5, window_bounds = array<i64: 16, 8>}, {pipeline_mode = #tpu.pipeline_mode<synchronous>, transform_indices = @transform_6, window_bounds = array<i64: 8, 16>}, {transform_indices = @transform_7, window_bounds = array<i64: 1, 16, 16>}]} {
    %c0 = arith.constant 0 : index
    %c0_0 = arith.constant 0 : index
    %c0_1 = arith.constant 0 : index
    %0 = vector.load %arg1[%c0, %c0_0, %c0_1] : memref<1x18x4xbf16, #tpu.memory_space<vmem>>, vector<1x16x4xbf16>
    %1 = vector.shape_cast %0 : vector<1x16x4xbf16> to vector<16x4xbf16>
    %c0_2 = arith.constant 0 : index
    %c0_3 = arith.constant 0 : index
    %c0_4 = arith.constant 0 : index
    %2 = vector.load %arg2[%c0_2, %c0_3, %c0_4] : memref<3x4x16xbf16, #tpu.memory_space<vmem>>, vector<1x4x16xbf16>
    %3 = vector.shape_cast %2 : vector<1x4x16xbf16> to vector<4x16xbf16>
    %cst = arith.constant dense<0.000000e+00> : vector<16x16xf32>
    %4 = tpu.matmul %1, %3, %cst {dimension_numbers = #tpu.dot_dimension_numbers<[1], [0], [0], [1], [0, 0, 1, 1], [], []>} : vector<16x4xbf16>, vector<4x16xbf16>, vector<16x16xf32> -> vector<16x16xf32>
    %c0_5 = arith.constant 0 : index
    %c1 = arith.constant 1 : index
    %c0_6 = arith.constant 0 : index
    %5 = vector.load %arg1[%c0_5, %c1, %c0_6] : memref<1x18x4xbf16, #tpu.memory_space<vmem>>, vector<1x16x4xbf16>
    %6 = vector.shape_cast %5 : vector<1x16x4xbf16> to vector<16x4xbf16>
    %c1_7 = arith.constant 1 : index
    %c0_8 = arith.constant 0 : index
    %c0_9 = arith.constant 0 : index
    %7 = vector.load %arg2[%c1_7, %c0_8, %c0_9] : memref<3x4x16xbf16, #tpu.memory_space<vmem>>, vector<1x4x16xbf16>
    %8 = vector.shape_cast %7 : vector<1x4x16xbf16> to vector<4x16xbf16>
    %cst_10 = arith.constant dense<0.000000e+00> : vector<16x16xf32>
    %9 = tpu.matmul %6, %8, %cst_10 {dimension_numbers = #tpu.dot_dimension_numbers<[1], [0], [0], [1], [0, 0, 1, 1], [], []>} : vector<16x4xbf16>, vector<4x16xbf16>, vector<16x16xf32> -> vector<16x16xf32>
    %10 = arith.addf %4, %9 : vector<16x16xf32>
    %c0_11 = arith.constant 0 : index
    %c2 = arith.constant 2 : index
    %c0_12 = arith.constant 0 : index
    %11 = vector.load %arg1[%c0_11, %c2, %c0_12] : memref<1x18x4xbf16, #tpu.memory_space<vmem>>, vector<1x16x4xbf16>
    %12 = vector.shape_cast %11 : vector<1x16x4xbf16> to vector<16x4xbf16>
    %c2_13 = arith.constant 2 : index
    %c0_14 = arith.constant 0 : index
    %c0_15 = arith.constant 0 : index
    %13 = vector.load %arg2[%c2_13, %c0_14, %c0_15] : memref<3x4x16xbf16, #tpu.memory_space<vmem>>, vector<1x4x16xbf16>
    %14 = vector.shape_cast %13 : vector<1x4x16xbf16> to vector<4x16xbf16>
    %cst_16 = arith.constant dense<0.000000e+00> : vector<16x16xf32>
    %15 = tpu.matmul %12, %14, %cst_16 {dimension_numbers = #tpu.dot_dimension_numbers<[1], [0], [0], [1], [0, 0, 1, 1], [], []>} : vector<16x4xbf16>, vector<4x16xbf16>, vector<16x16xf32> -> vector<16x16xf32>
    %16 = arith.addf %10, %15 : vector<16x16xf32>
    %c0_17 = arith.constant 0 : index
    %c0_18 = arith.constant 0 : index
    %17 = vector.load %arg3[%c0_17, %c0_18] : memref<1x16xf32, #tpu.memory_space<vmem>>, vector<1x16xf32>
    %18 = vector.broadcast %17 : vector<1x16xf32> to vector<16x16xf32>
    %19 = arith.addf %16, %18 : vector<16x16xf32>
    %c0_19 = arith.constant 0 : index
    %c0_20 = arith.constant 0 : index
    %c0_21 = arith.constant 0 : index
    %20 = vector.load %arg8[%c0_19, %c0_20, %c0_21] : memref<1x16x16xf32, #tpu.memory_space<vmem>>, vector<1x16x16xf32>
    %21 = vector.shape_cast %20 : vector<1x16x16xf32> to vector<16x16xf32>
    %22 = vector.shape_cast %19 : vector<16x16xf32> to vector<1x16x16xf32>
    tpu.vector_store %arg8[%c0_19, %c0_20, %c0_21], %22 {strides = array<i32>} : memref<1x16x16xf32, #tpu.memory_space<vmem>>, vector<1x16x16xf32>,
    %cst_22 = arith.constant dense<0.000000e+00> : vector<16xf32>
    %23 = vector.multi_reduction <add>, %19, %cst_22 [0] : vector<16x16xf32> to vector<16xf32>
    %24 = vector.shape_cast %23 : vector<16xf32> to vector<1x16xf32>
    %c0_23 = arith.constant 0 : index
    %c0_24 = arith.constant 0 : index
    %25 = vector.load %arg9[%c0_23, %c0_24] : memref<1x16xf32, #tpu.memory_space<vmem>>, vector<1x16xf32>
    tpu.vector_store %arg9[%c0_23, %c0_24], %24 {strides = array<i32>} : memref<1x16xf32, #tpu.memory_space<vmem>>, vector<1x16xf32>,
    %26 = arith.mulf %19, %19 : vector<16x16xf32>
    %cst_25 = arith.constant dense<0.000000e+00> : vector<16xf32>
    %27 = vector.multi_reduction <add>, %26, %cst_25 [0] : vector<16x16xf32> to vector<16xf32>
    %28 = vector.shape_cast %27 : vector<16xf32> to vector<1x16xf32>
    %c0_26 = arith.constant 0 : index
    %c0_27 = arith.constant 0 : index
    %29 = vector.load %arg10[%c0_26, %c0_27] : memref<1x16xf32, #tpu.memory_space<vmem>>, vector<1x16xf32>
    tpu.vector_store %arg10[%c0_26, %c0_27], %28 {strides = array<i32>} : memref<1x16xf32, #tpu.memory_space<vmem>>, vector<1x16xf32>,
    %c0_28 = arith.constant 0 : index
    %c0_29 = arith.constant 0 : index
    %30 = vector.load %arg9[%c0_28, %c0_29] : memref<1x16xf32, #tpu.memory_space<vmem>>, vector<1x16xf32>
    %c0_30 = arith.constant 0 : index
    %c0_31 = arith.constant 0 : index
    %31 = vector.load %arg6[%c0_30, %c0_31] : memref<16x8xf32, #tpu.memory_space<vmem>>, vector<16x8xf32>
    %cst_32 = arith.constant dense<0.000000e+00> : vector<1x8xf32>
    %32 = tpu.matmul %30, %31, %cst_32 {dimension_numbers = #tpu.dot_dimension_numbers<[1], [0], [0], [1], [0, 0, 1, 1], [], []>} : vector<1x16xf32>, vector<16x8xf32>, vector<1x8xf32> -> vector<1x8xf32>
    %c0_33 = arith.constant 0 : index
    %c0_34 = arith.constant 0 : index
    %33 = vector.load %arg10[%c0_33, %c0_34] : memref<1x16xf32, #tpu.memory_space<vmem>>, vector<1x16xf32>
    %c0_35 = arith.constant 0 : index
    %c0_36 = arith.constant 0 : index
    %34 = vector.load %arg6[%c0_35, %c0_36] : memref<16x8xf32, #tpu.memory_space<vmem>>, vector<16x8xf32>
    %cst_37 = arith.constant dense<0.000000e+00> : vector<1x8xf32>
    %35 = tpu.matmul %33, %34, %cst_37 {dimension_numbers = #tpu.dot_dimension_numbers<[1], [0], [0], [1], [0, 0, 1, 1], [], []>} : vector<1x16xf32>, vector<16x8xf32>, vector<1x8xf32> -> vector<1x8xf32>
    %cst_38 = arith.constant 3.125000e-02 : f32
    %36 = vector.broadcast %cst_38 : f32 to vector<1x8xf32>
    %37 = arith.mulf %32, %36 : vector<1x8xf32>
    %cst_39 = arith.constant 3.125000e-02 : f32
    %38 = vector.broadcast %cst_39 : f32 to vector<1x8xf32>
    %39 = arith.mulf %35, %38 : vector<1x8xf32>
    %40 = arith.mulf %37, %37 : vector<1x8xf32>
    %41 = arith.subf %39, %40 : vector<1x8xf32>
    %cst_40 = arith.constant 0.000000e+00 : f32
    %42 = vector.broadcast %cst_40 : f32 to vector<1x8xf32>
    %43 = arith.maximumf %41, %42 : vector<1x8xf32>
    %cst_41 = arith.constant 9.99999974E-6 : f32
    %44 = vector.broadcast %cst_41 : f32 to vector<1x8xf32>
    %45 = arith.addf %43, %44 : vector<1x8xf32>
    %46 = math.rsqrt %45 : vector<1x8xf32>
    %c0_42 = arith.constant 0 : index
    %c0_43 = arith.constant 0 : index
    %47 = vector.load %arg7[%c0_42, %c0_43] : memref<8x16xf32, #tpu.memory_space<vmem>>, vector<8x16xf32>
    %cst_44 = arith.constant dense<0.000000e+00> : vector<1x16xf32>
    %48 = tpu.matmul %37, %47, %cst_44 {dimension_numbers = #tpu.dot_dimension_numbers<[1], [0], [0], [1], [0, 0, 1, 1], [], []>} : vector<1x8xf32>, vector<8x16xf32>, vector<1x16xf32> -> vector<1x16xf32>
    %c0_45 = arith.constant 0 : index
    %c0_46 = arith.constant 0 : index
    %49 = vector.load %arg7[%c0_45, %c0_46] : memref<8x16xf32, #tpu.memory_space<vmem>>, vector<8x16xf32>
    %cst_47 = arith.constant dense<0.000000e+00> : vector<1x16xf32>
    %50 = tpu.matmul %46, %49, %cst_47 {dimension_numbers = #tpu.dot_dimension_numbers<[1], [0], [0], [1], [0, 0, 1, 1], [], []>} : vector<1x8xf32>, vector<8x16xf32>, vector<1x16xf32> -> vector<1x16xf32>
    %c0_48 = arith.constant 0 : index
    %c0_49 = arith.constant 0 : index
    %51 = vector.load %arg4[%c0_48, %c0_49] : memref<1x16xf32, #tpu.memory_space<vmem>>, vector<1x16xf32>
    %52 = arith.mulf %50, %51 : vector<1x16xf32>
    %c0_50 = arith.constant 0 : index
    %c0_51 = arith.constant 0 : index
    %53 = vector.load %arg5[%c0_50, %c0_51] : memref<1x16xf32, #tpu.memory_space<vmem>>, vector<1x16xf32>
    %54 = arith.mulf %48, %52 : vector<1x16xf32>
    %55 = arith.subf %53, %54 : vector<1x16xf32>
    %c0_52 = arith.constant 0 : index
    %c0_53 = arith.constant 0 : index
    %c0_54 = arith.constant 0 : index
    %56 = vector.load %arg8[%c0_52, %c0_53, %c0_54] : memref<1x16x16xf32, #tpu.memory_space<vmem>>, vector<1x16x16xf32>
    %57 = vector.shape_cast %56 : vector<1x16x16xf32> to vector<16x16xf32>
    %58 = vector.broadcast %52 : vector<1x16xf32> to vector<16x16xf32>
    %59 = arith.mulf %57, %58 : vector<16x16xf32>
    %60 = vector.broadcast %55 : vector<1x16xf32> to vector<16x16xf32>
    %61 = arith.addf %59, %60 : vector<16x16xf32>
    %62 = math.absf %61 : vector<16x16xf32>
    %cst_55 = arith.constant 0.000000e+00 : f32
    %63 = vector.broadcast %cst_55 : f32 to vector<16x16xf32>
    %64 = arith.subf %63, %62 : vector<16x16xf32>
    %65 = math.exp %64 : vector<16x16xf32>
    %66 = arith.mulf %65, %65 : vector<16x16xf32>
    %cst_56 = arith.constant 0.000000e+00 : f32
    %67 = vector.broadcast %cst_56 : f32 to vector<16x16xf32>
    %68 = arith.cmpf oge, %61, %67 : vector<16x16xf32>
    %cst_57 = arith.constant 2.000000e+00 : f32
    %69 = vector.broadcast %cst_57 : f32 to vector<16x16xf32>
    %70 = arith.mulf %69, %65 : vector<16x16xf32>
    %cst_58 = arith.constant 1.000000e+00 : f32
    %71 = vector.broadcast %cst_58 : f32 to vector<16x16xf32>
    %72 = arith.addf %71, %70 : vector<16x16xf32>
    %cst_59 = arith.constant 2.000000e+00 : f32
    %73 = vector.broadcast %cst_59 : f32 to vector<16x16xf32>
    %74 = arith.mulf %73, %65 : vector<16x16xf32>
    %75 = arith.addf %66, %74 : vector<16x16xf32>
    %76 = arith.select %68, %72, %75 : vector<16x16xi1>, vector<16x16xf32>
    %cst_60 = arith.constant 2.000000e+00 : f32
    %77 = vector.broadcast %cst_60 : f32 to vector<16x16xf32>
    %78 = arith.mulf %77, %66 : vector<16x16xf32>
    %cst_61 = arith.constant 2.000000e+00 : f32
    %79 = vector.broadcast %cst_61 : f32 to vector<16x16xf32>
    %80 = arith.select %68, %78, %79 : vector<16x16xi1>, vector<16x16xf32>
    %81 = arith.addf %76, %80 : vector<16x16xf32>
    %82 = arith.mulf %61, %76 : vector<16x16xf32>
    %83 = tpu.reciprocal %81 {approx = true} : vector<16x16xf32> -> vector<16x16xf32>
    %84 = arith.mulf %82, %83 : vector<16x16xf32>
    %c0_62 = arith.constant 0 : index
    %c0_63 = arith.constant 0 : index
    %c0_64 = arith.constant 0 : index
    %85 = vector.load %arg8[%c0_62, %c0_63, %c0_64] : memref<1x16x16xf32, #tpu.memory_space<vmem>>, vector<1x16x16xf32>
    %86 = vector.shape_cast %85 : vector<1x16x16xf32> to vector<16x16xf32>
    %87 = vector.shape_cast %84 : vector<16x16xf32> to vector<1x16x16xf32>
    tpu.vector_store %arg8[%c0_62, %c0_63, %c0_64], %87 {strides = array<i32>} : memref<1x16x16xf32, #tpu.memory_space<vmem>>, vector<1x16x16xf32>,
    return
  }
  func.func @transform_0(%arg0: i32) -> (i32, i32, i32) {
    %c0_i32 = arith.constant 0 : i32
    %c0_i32_0 = arith.constant 0 : i32
    %c0_i32_1 = arith.constant 0 : i32
    return %arg0, %c0_i32, %c0_i32_0 : i32, i32, i32
  }
  func.func @transform_1(%arg0: i32) -> (i32, i32, i32) {
    %c0_i32 = arith.constant 0 : i32
    %c0_i32_0 = arith.constant 0 : i32
    %c0_i32_1 = arith.constant 0 : i32
    %c0_i32_2 = arith.constant 0 : i32
    return %c0_i32, %c0_i32_0, %c0_i32_1 : i32, i32, i32
  }
  func.func @transform_2(%arg0: i32) -> (i32, i32) {
    %c0_i32 = arith.constant 0 : i32
    %c0_i32_0 = arith.constant 0 : i32
    %c0_i32_1 = arith.constant 0 : i32
    return %c0_i32, %c0_i32_0 : i32, i32
  }
  func.func @transform_3(%arg0: i32) -> (i32, i32) {
    %c0_i32 = arith.constant 0 : i32
    %c0_i32_0 = arith.constant 0 : i32
    %c0_i32_1 = arith.constant 0 : i32
    return %c0_i32, %c0_i32_0 : i32, i32
  }
  func.func @transform_4(%arg0: i32) -> (i32, i32) {
    %c0_i32 = arith.constant 0 : i32
    %c0_i32_0 = arith.constant 0 : i32
    %c0_i32_1 = arith.constant 0 : i32
    return %c0_i32, %c0_i32_0 : i32, i32
  }
  func.func @transform_5(%arg0: i32) -> (i32, i32) {
    %c0_i32 = arith.constant 0 : i32
    %c0_i32_0 = arith.constant 0 : i32
    %c0_i32_1 = arith.constant 0 : i32
    return %c0_i32, %c0_i32_0 : i32, i32
  }
  func.func @transform_6(%arg0: i32) -> (i32, i32) {
    %c0_i32 = arith.constant 0 : i32
    %c0_i32_0 = arith.constant 0 : i32
    %c0_i32_1 = arith.constant 0 : i32
    return %c0_i32, %c0_i32_0 : i32, i32
  }
  func.func @transform_7(%arg0: i32) -> (i32, i32, i32) {
    %c0_i32 = arith.constant 0 : i32
    %c0_i32_0 = arith.constant 0 : i32
    %c0_i32_1 = arith.constant 0 : i32
    return %arg0, %c0_i32, %c0_i32_0 : i32, i32, i32
  }
}

</mosaic_0001>

<bundles_post_ra>
// kernel: tpu_custom_call.1
= control target key start
LH: loop header
LB: loop body
LE: loop exit
PB: predicated region body
PF: predicated region fallthrough
CT: control target
= control target key end

     0   :  { %12 = vsyncpa [#allocation5], 0  ;;  %s1365_s0 = inlined_call_operand.vmem [shape: bf16[2,18,4], index: 0, kind: input, shape index: {}]   ;;  %s1366_s1 = inlined_call_operand.vmem [shape: bf16[3,4,16], index: 1, kind: input, shape index: {}]   ;;  %s1367_s2 = inlined_call_operand.vmem [shape: f32[1,16], index: 2, kind: input, shape index: {}]   ;;  %s1368_s3 = inlined_call_operand.vmem [shape: f32[1,16], index: 3, kind: input, shape index: {}]   ;;  %s1369_s4 = inlined_call_operand.vmem [shape: f32[1,16], index: 4, kind: input, shape index: {}]   ;;  %s1370_s5 = inlined_call_operand.vmem [shape: f32[16,8], index: 5, kind: input, shape index: {}]   ;;  %s1371_s6 = inlined_call_operand.vmem [shape: f32[8,16], index: 6, kind: input, shape index: {}]   ;;  %s1372_s7 = inlined_call_operand.hbm [shape: f32[2,16,16], index: 7, kind: output, shape index: {}]  }
   0x1   :  { %14 = vsyncpa [#allocation5 + $0x1], 0  ;;  %s1187_s24 = smov 0   ;;  %s1189_s25 = smov 0  }
   0x2   :  { %s1191_s26 = smov 0   ;;  %s1193_s27 = smov 0  }
   0x3 LB: > { %s1208_s28 = sadd.s32 4294967295, %s1139_s27   ;;  %s930_s29 = sadd.s32 4294967294, %s1139_s27   ;;  %s1139_s27 = sphi %s1193_s27, %s1378_s27   ;;  %s1135_s26 = sphi %s1191_s26, %s1377_s26   ;;  %s1131_s25 = sphi %s1189_s25, %s1376_s25   ;;  %s1127_s24 = sphi %s1187_s24, %s1375_s24  }
   0x4   : > { %s1212_s30 = sadd.s32 1, %s1139_s27   ;;  %s179_s8 = sadd.s32 1, %s1135_s26 }
   0x5   : > { %s176_s9 = ssub.s32 %s1139_s27, %s1212_s30  ;;  %p189_p0 = scmp.ne.s32.totalorder %s1135_s26, %s1131_s25 }
   0x6   : > { %p177_p1 = scmp.eq.s32.totalorder %s176_s9, 0  ;;  %p190_p2 = scmp.eq.s32.totalorder %s1208_s28, 1 }
   0x7   : > { %p195_p3 = scmp.ne.s32.totalorder %s1131_s25, %s1127_s24  ;;  %p196_p4 = scmp.eq.s32.totalorder %s930_s29, 1 }
   0x8   : > { %s1223_s10 = scalar_select %p177_p1, %s1135_s26, %s179_s8  }
   0x9   : > { %p1225_p5 = por %p190_p2, %p189_p0  ;;  %p1229_p6 = por %p196_p4, %p195_p3 }
   0xa   : > { %p933_p7 = scmp.ge.s32.totalorder %s1139_s27, 1  ;;  %p240_p8 = scmp.lt.s32.totalorder %s1139_s27, 3 }
   0xc   : > { %p241_p9 = pnand %p933_p7, %p240_p8 }
   0xd   : > { %v936_v0 = vld [vmem:[%s1366_s1 + $0x2] sm:$0x3] (!%p241_p9)  ;;  %vm309_vm0 = vcmask (!%p241_p9), 1041408   ;;  %v280_v1 = vld [vmem:[%s1366_s1] sm:$0x3] (!%p241_p9)  ;;  %v1141_v2 = vmov (!%p241_p9), 0.0  }
   0xe   : > { %244 = sbr.rel (%p241_p9) target bundleno = 795 (0x31b), region = 48  ;;  %971 = vmatprep.subr.bf16.mxu0 (!%p241_p9), %v1141_v2  ;;  %v311_v3 = vsel (!%p241_p9), %vm309_vm0, %v936_v0, 0  ;;  %977 = vmatprep.subr.bf16.mxu1 (!%p241_p9), %v1141_v2  ;;  %v357_v4 = vsel (!%p241_p9), %vm309_vm0, %v280_v1, 0  ;;  %p272_p10 = scmp.lt.s32.totalorder (!%p241_p9), %s1208_s28, 1  ;;  %vm1142_vm1 = vmmov (!%p241_p9), 0   ;;  %vm305_vm2 = vcmask (!%p241_p9), 31744  }
   0xf   : > { %972 = vmatpush3.bf16.msra.mxu0 (!%p241_p9), %v311_v3  ;;  %978 = vmatpush3.bf16.msra.mxu1 (!%p241_p9), %v357_v4  ;;  %v941_v15 = vld [vmem:[%s1366_s1 + $0x4] sm:$0x3] (!%p241_p9)  ;;  %vm292_vm3 = vsmask.f32 (!%p241_p9), 7424  ;;  %vm406_vm4 = vcmask (!%p241_p9), 1046528   ;;  %v496_v24 = vld [vmem:[%s1370_s5 + $0x8] sm:$0xff] (!%p241_p9) }
  0x10   : > { %973 = vmatprep.mubr.msk.bf16.mxu0 (!%p241_p9), %vm1142_vm1, %v1141_v2  ;;  %979 = vmatprep.mubr.msk.bf16.mxu1 (!%p241_p9), %vm1142_vm1, %v1141_v2  ;;  %v414_v18 = vsel (!%p241_p9), %vm309_vm0, %v941_v15, 0  ;;  %v495_v23 = vld [vmem:[%s1370_s5] sm:$0xff] (!%p241_p9)  ;;  %v1143_v25 = vmov (!%p241_p9), 0.0|0.0   ;;  %s269_s14 = sand.u32 (!%p241_p9), 1, %s1131_s25   ;;  %vm468_vm5 = vcmask (!%p241_p9), 130048   ;;  %vm480_vm6 = vcmask (!%p241_p9), 122880  }
  0x11   : > { %983 = vmatprep.subr.bf16.mxu0 (!%p241_p9), %v1141_v2  ;;  %1013 = vmatprep.subr.bf16.mxu1 (!%p241_p9), %v1143_v25  ;;  %v1014_v26 = vpack.c.bf16 (!%p241_p9), %v496_v24, %v495_v23  ;;  %s934_s15 = sshll.u32 (!%p241_p9), %s269_s14, 4  ;;  %v944_v38 = vld [vmem:[%s1367_s2] ss:$0 sm:$0xff] (!%p241_p9)  ;;  %vm652_vm7 = vcmask (!%p241_p9), 64512   ;;  %s954_s8 = sshll.u32 (!%p241_p9), %s1208_s28, 8 }
  0x12   : > { %s1314_s16 = scalar_lea.hbm (!%p241_p9), %s1372_s7, %s954_s8  ;;  %s1144_s19 = smov (!%p241_p9), [#allocation4]  }
  0x13   : > { %s1081_s20 = sshll.u32 (!%p241_p9), %s1144_s19, 4  ;;  %s1082_s20 = int_to_ptr.vmem [resolvable:$false] %s1081_s20 }
  0x15   : > { %s273_s17 = scalar_select %p272_p10, %s1208_s28, 1 }
  0x16   : > { %s1324_s28 = scalar_lea.sflag [#allocation5], %s269_s14 }
  0x17   : > { %s1019_s18 = smul.u32 12, %s273_s17 }
  0x19   : > { %s276_s21 = scalar_lea.vmem %s1365_s0, %s1019_s18  ;;  %s1281_s18 = scalar_lea.vmem [#allocation4], %s934_s15 }
  0x1a   : > { %v278_v5 = vld [vmem:[%s276_s21] sm:$0xf]  ;;  %v279_v6 = vld [vmem:[%s276_s21 + $0x4] sm:$0xf]  ;;  %s868_s9 = sshll.u32 %s1281_s18, 4  ;;  %s1316_s9 = int_to_ptr.vmem [resolvable:$true] %s868_s9 }
  0x1b   : > { %v937_v7 = vcombine.low %v278_v5, %v279_v6  ;;  %v1065_v8 = vld [vmem:[%s276_s21 + $0x8] ss:$0 sps:$4 sm:$0x11]   ;;  %v400_v12 = vld [vmem:[%s276_s21] sm:$0xe]  ;;  %s1077_s17 = scalar_lea.vmem %s1316_s9, 256  ;;  %p1084_p0 = scmp.lt.s32.totalorder %s1316_s9, %s1082_s20 }
  0x1c   : > { %v301_v11 = vshll.u32 %v1065_v8, 16  ;;  %v942_v17 = vcombine.low %v400_v12, %v279_v6  ;;  %v408_v21 = vrot.slane %v1065_v8, 1  ;;  %v651_v5 = vld [vmem:[%s1371_s6] sm:$0xff]  ;;  %p1078_p11 = scmp.ne.s32.totalorder %s1316_s9, %s1077_s17  ;;  %s1083_s21 = scalar_lea.vmem %s1082_s20, 512 }
  0x1d   : > { %v294_v9 = vshrl.u32 %v937_v7, 16  ;;  %v296_v10 = vshll.u32 %v937_v7, 16  ;;  %980 = vmatmul.mubr.msk.bf16.vlgmr.msra.gmra.mrb[0].mxu1 %vm305_vm2, %v937_v7  ;;  %p1085_p1 = scmp.lt.s32.totalorder %s1083_s21, %s1077_s17 }
  0x1e   : > { %993 = vmatprep.mubr.msk.f32.mxu1 %vm1142_vm1, %v1141_v2  ;;  %v303_v14 = vrot.slane %v301_v11, 1  ;;  %v407_v20 = vrot.slane %v942_v17, 1  ;;  %1015 = vmatpush3.bf16.msra.mxu1 %v1014_v26  ;;  %p1079_p12 = pnand %p1078_p11, %p1225_p5 }
  0x1f   : > { %v298_v13 = vrot.slane %v296_v10, 1  ;;  %1016 = vmatprep.subr.bf16.mxu1 %v1143_v25  ;;  %v801_v25 = vld [vmem:[%s1369_s4] sm:$0x1]  ;;  %p1086_p2 = por %p1085_p1, %p1084_p0 }
  0x20   : > { %v409_v22 = vsel %vm406_vm4, %v407_v20, %v408_v21  ;;  %v799_v20 = vld [vmem:[%s1368_s3] sm:$0x1]  ;;  %p1080_p13 = pneg %p1079_p12 }
  0x21   : > { %v299_v16 = vor.u32 %v298_v13, %v294_v9 }
  0x22   : > { %p1087_p3 = pnand %p1086_p2, %p1080_p13 }
  0x23   : > { %v304_v19 = vsel %vm292_vm3, %v299_v16, %v303_v14 }
  0x24   : > { %974 = vmatmul.mubr.msk.bf16.vlgmr.msra.gmra.mrb[0].mxu0 %vm305_vm2, %v304_v19 }
  0x25   : > { %984 = vmatpush3.bf16.msra.mxu0 %v414_v18  ;;  %985 = vmatprep.mubr.msk.bf16.mxu0 %vm1142_vm1, %v1141_v2  ;;  %v806_v18 = vlaneseq }
  0x26   : > { %1003 = vmatprep.subr.mxu0 %v1141_v2 }
  0x27   : > { %v807_v19 = vshrl.u32 %v806_v18, 7 }
  0x29   : > { %v808_v21 = vsub.s32 0, %v807_v19 }
  0x2c   : > { %986 = vmatmul.mubr.msk.bf16.vlgmr.msra.gmra.mrb[4].mxu0 %vm305_vm2, %v409_v22 }
  0x2d   : > { %1005 = vmatprep.mubr.msk.f32.mxu0 %vm1142_vm1, %v1141_v2  ;;  %1004 = vmatpush3.msra.mxu0 %v651_v5 }
  0xf0   : > { %v393_v27 = vpop.f32.mrb[0].mxu1 }
  0xf1   : > { %v981_v28 = vpop.f32.mrb[1].mxu1 }
  0xf2   : > { %v396_v29 = vpop.f32.mrb[2].mxu1 }
  0xf3   : > { %v982_v30 = vpop.f32.mrb[3].mxu1 }
  0xf7   : > { %v347_v31 = vpop.f32.mrb[0].mxu0 }
  0xf8   : > { %v394_v32 = vadd.f32 %v393_v27, %v347_v31  ;;  %v975_v33 = vpop.f32.mrb[1].mxu0 }
  0xf9   : > { %v350_v34 = vpop.f32.mrb[2].mxu0 }
  0xfa   : > { %v397_v35 = vadd.f32 %v396_v29, %v350_v34  ;;  %v976_v36 = vpop.f32.mrb[3].mxu0 }
  0xff   : > { %v450_v37 = vpop.f32.mrb[4].mxu0 }
 0x100   : > { %v457_v39 = vadd.f32 %v450_v37, %v394_v32  ;;  %v987_v40 = vpop.f32.mrb[5].mxu0 }
 0x101   : > { %v453_v41 = vpop.f32.mrb[6].mxu0 }
 0x102   : > { %v466_v42 = vadd.f32 %v944_v38, %v457_v39  ;;  %v458_v43 = vadd.f32 %v453_v41, %v397_v35  ;;  %v988_v44 = vpop.f32.mrb[7].mxu0 }
 0x104   : > { %469 = vst.msk [vmem:[%s1281_s18] sm:$0xff] %vm468_vm5, %v466_v42  ;;  %v482_v45 = vmul.f32 %v466_v42, %v466_v42  ;;  %v467_v46 = vadd.f32 %v944_v38, %v458_v43  ;;  %v471_v47 = vsel %vm468_vm5, %v466_v42, 0.0 }
 0x106   : > { %470 = vst.msk [vmem:[%s1281_s18 + $0x8] sm:$0xff] %vm468_vm5, %v467_v46  ;;  %v472_v48 = vsel %vm468_vm5, %v467_v46, 0.0  ;;  %v483_v49 = vmul.f32 %v467_v46, %v467_v46  ;;  %v484_v51 = vsel %vm468_vm5, %v482_v45, 0.0 }
 0x107   : > { %v473_v50 = vadd.f32 %v472_v48, %v471_v47 }
 0x108   : > { %v485_v52 = vsel %vm468_vm5, %v483_v49, 0.0 }
 0x109   : > { %v474_v53 = vrot.slane %v473_v50, 4  ;;  %v486_v54 = vadd.f32 %v485_v52, %v484_v51 }
 0x10b   : > { %v475_v55 = vadd.f32 %v474_v53, %v473_v50  ;;  %v487_v56 = vrot.slane %v486_v54, 4  ;;  %v804_v29 = vld [vmem:[%s1281_s18] sm:$0xff] }
 0x10d   : > { %v476_v57 = vrot.slane %v475_v55, 2  ;;  %v488_v58 = vadd.f32 %v487_v56, %v486_v54  ;;  %v805_v30 = vld [vmem:[%s1281_s18 + $0x8] sm:$0xff] }
 0x10f   : > { %v477_v59 = vadd.f32 %v476_v57, %v475_v55  ;;  %v489_v60 = vrot.slane %v488_v58, 2 }
 0x111   : > { %v478_v61 = vrot.slane %v477_v59, 1  ;;  %v490_v62 = vadd.f32 %v489_v60, %v488_v58 }
 0x113   : > { %v479_v63 = vadd.f32 %v478_v61, %v477_v59  ;;  %v491_v0 = vrot.slane %v490_v62, 1 }
 0x115   : > { %481 = vst.msk [vmem:[#allocation2] sm:$0x1] %vm480_vm6, %v479_v63  ;;  %v492_v1 = vadd.f32 %v491_v0, %v490_v62 }
 0x117   : > { %493 = vst.msk [vmem:[#allocation3] sm:$0x1] %vm480_vm6, %v492_v1 }
 0x11c   : > { %v494_v3 = vld [vmem:[#allocation2] sm:$0x1] }
 0x11d   : > { %994 = vmatmul.mubr.msk.f32.vlgmr.msra.gmra.mrb[4].mxu1 %vm468_vm5, %v494_v3 }
 0x11e   : > { %1018 = vmatpush3.bf16.msra.mxu1 %v1014_v26  ;;  %1000 = vmatprep.mubr.msk.f32.mxu1 %vm1142_vm1, %v1141_v2  ;;  %v570_v4 = vld [vmem:[#allocation3] sm:$0x1] }
 0x11f   : > { %1008 = vmatprep.subr.mxu1 %v1141_v2 }
 0x121   : > { %1001 = vmatmul.mubr.msk.f32.vlgmr.msra.gmra.mrb[6].mxu1 %vm468_vm5, %v570_v4 }
 0x122   : > { %1010 = vmatprep.mubr.msk.f32.mxu1 %vm1142_vm1, %v1141_v2  ;;  %1009 = vmatpush3.msra.mxu1 %v651_v5 }
 0x1f0   : > { %v566_v6 = vpop.f32.mrb[4].mxu1 }
 0x1f1   : > { %v644_v7 = vmul.f32 0.03125, %v566_v6  ;;  %v995_v8 = vpop.f32.mrb[5].mxu1 }
 0x1f3   : > { %1006 = vmatmul.mubr.msk.f32.vlgmr.msra.gmra.mrb[8].mxu0 %vm652_vm7, %v644_v7  ;;  %v646_v10 = vmul.f32 %v644_v7, %v644_v7 }
 0x1f4   : > { %v640_v9 = vpop.f32.mrb[6].mxu1 }
 0x1f5   : > { %v645_v11 = vmul.f32 0.03125, %v640_v9  ;;  %v1002_v12 = vpop.f32.mrb[7].mxu1 }
 0x1f7   : > { %v647_v13 = vsub.f32 %v645_v11, %v646_v10 }
 0x1f9   : > { %v648_v14 = vmax.f32 %v647_v13, 0.0 }
 0x1fb   : > { %v649_v15 = vadd.f32 1e-05, %v648_v14 }
 0x1fd   : > { %1067 = vrsqrt.f32 %v649_v15 }
 0x207   : > { %v1068_v2 = vpop.eup %1067 }
 0x208   : > { %1011 = vmatmul.mubr.msk.f32.vlgmr.msra.gmra.mrb[8].mxu1 %vm652_vm7, %v1068_v2 }
 0x2c6   : > { %v722_v16 = vpop.f32.mrb[8].mxu0 }
 0x2c7   : > { %v1007_v17 = vpop.f32.mrb[9].mxu0 }
 0x2db   : > { %v795_v22 = vpop.f32.mrb[8].mxu1 }
 0x2dc   : > { %v800_v23 = vmul.f32 %v799_v20, %v795_v22  ;;  %v1012_v24 = vpop.f32.mrb[9].mxu1 }
 0x2de   : > { %v802_v26 = vmul.f32 %v800_v23, %v722_v16  ;;  %v809_v27 = vrot.slane %v800_v23, %v808_v21 }
 0x2e0   : > { %v803_v28 = vsub.f32 %v801_v25, %v802_v26  ;;  %v810_v31 = vmul.f32 %v809_v27, %v804_v29  ;;  %v811_v32 = vmul.f32 %v809_v27, %v805_v30 }
 0x2e2   : > { %v816_v33 = vrot.slane %v803_v28, %v808_v21 }
 0x2e4   : > { %v818_v34 = vadd.f32 %v816_v33, %v810_v31  ;;  %v819_v35 = vadd.f32 %v816_v33, %v811_v32 }
 0x2e6   : > { %v820_v36 = vand.u32 2147483647, %v818_v34  ;;  %v821_v37 = vand.u32 2147483647, %v819_v35  ;;  %vm830_vm8 = vcmp.ge.f32.partialorder %v818_v34, 0.0  ;;  %vm831_vm9 = vcmp.ge.f32.partialorder %v819_v35, 0.0 }
 0x2e8   : > { %v822_v38 = vsub.f32 0.0, %v820_v36  ;;  %v823_v39 = vsub.f32 0.0, %v821_v37 }
 0x2ea   : > { %v824_v40 = vmul.f32 1.442695, %v822_v38  ;;  %v826_v41 = vmul.f32 1.442695, %v823_v39 }
 0x2ec   : > { %1069 = vpow2.f32 %v824_v40 }
 0x2ed   : > { %1071 = vpow2.f32 %v826_v41 }
 0x2f6   : > { %v1070_v42 = vpop.eup %1069 }
 0x2f7   : > { %v1072_v43 = vpop.eup %1071  ;;  %v828_v44 = vmul.f32 %v1070_v42, %v1070_v42  ;;  %v832_v45 = vmul.f32 2.0, %v1070_v42 }
 0x2f8   : > { %v829_v46 = vmul.f32 %v1072_v43, %v1072_v43  ;;  %v833_v47 = vmul.f32 2.0, %v1072_v43 }
 0x2f9   : > { %v834_v48 = vadd.f32 1.0, %v832_v45  ;;  %v836_v49 = vadd.f32 %v832_v45, %v828_v44  ;;  %v840_v50 = vmul.f32 2.0, %v828_v44 }
 0x2fa   : > { %v835_v51 = vadd.f32 1.0, %v833_v47  ;;  %v837_v52 = vadd.f32 %v833_v47, %v829_v46  ;;  %v841_v53 = vmul.f32 2.0, %v829_v46 }
 0x2fb   : > { %v838_v54 = vsel %vm830_vm8, %v834_v48, %v836_v49  ;;  %v842_v55 = vsel %vm830_vm8, %v840_v50, 2.0 }
 0x2fc   : > { %v839_v56 = vsel %vm831_vm9, %v835_v51, %v837_v52  ;;  %v843_v57 = vsel %vm831_vm9, %v841_v53, 2.0  ;;  %v844_v58 = vadd.f32 %v842_v55, %v838_v54  ;;  %v846_v60 = vmul.f32 %v838_v54, %v818_v34 }
 0x2fd   : > { %v845_v59 = vadd.f32 %v843_v57, %v839_v56  ;;  %v847_v62 = vmul.f32 %v839_v56, %v819_v35 }
 0x2fe   : > { %1073 = vrcp.f32 %v844_v58 }
 0x2ff   : > { %1075 = vrcp.f32 %v845_v59 }
 0x308   : > { %v1074_v61 = vpop.eup %1073 }
 0x309   : > { %v1076_v63 = vpop.eup %1075  ;;  %v850_v0 = vmul.f32 %v1074_v61, %v846_v60 }
 0x30a   : > { %v851_v1 = vmul.f32 %v1076_v63, %v847_v62 }
 0x30b   : > { %852 = vst.msk [vmem:[%s1281_s18] sm:$0xff] %vm468_vm5, %v850_v0 }
 0x30c   : > { %853 = vst.msk [vmem:[%s1281_s18 + $0x8] sm:$0xff] %vm468_vm5, %v851_v1 }
 0x30d   : > { %1090 = shalt.err (!%p1087_p3)
}
 0x30e   : > { %s1091_s14 = scalar_lea.hbm %s1314_s16, 256  ;;  %s1095_s23 = scalar_lea.hbm %s1372_s7, 512 }
 0x30f   : > { %p1092_p4 = scmp.ne.s32.totalorder %s1314_s16, %s1091_s14  ;;  %p1096_p9 = scmp.lt.u32.totalorder %s1314_s16, %s1372_s7 }
 0x310   : > { %p1097_p10 = scmp.lt.u32.totalorder %s1095_s23, %s1091_s14  ;;  %p1099_p12 = scmp.lt.u32.totalorder %s1091_s14, %s1314_s16 }
 0x311   : > { %p1093_p7 = pnand %p1092_p4, %p1225_p5 }
 0x312   : > { %p1098_p11 = por %p1097_p10, %p1096_p9 }
 0x313   : > { %p1094_p8 = pneg %p1093_p7 }
 0x314   : > { %p1100_p13 = por %p1099_p12, %p1098_p11 }
 0x316   : > { %p1101_p0 = pnand %p1100_p13, %p1094_p8 }
 0x318   : > { %1104 = shalt.err (!%p1101_p0)
}
 0x319   : > { %s1145_s13 = smov 128   ;;  %s1146_s15 = smov 8  }
 0x31a   : > { %1020 = dma.vmem_to_hbm [thread:$0]  (%p1225_p5), %s1316_s9, 256, %s1314_s16, %s1324_s28, %s1145_s13, %s1145_s13, %s1146_s15  }
 0x31b PF: > { %p1026_p1 = scmp.ge.s32.totalorder %s1139_s27, 2  ;;  %s883_s17 = sand.u32 1, %s1127_s24  }
 0x31c   : > { %s884_s19 = scalar_lea.sflag [#allocation5], %s883_s17 }
 0x31d   : > { %p1023_p2 = pnand %p1026_p1, %p1229_p6 }
 0x31f   : > { %1122 = dma.done.wait (!%p1023_p2), %s884_s19, 256  }
 0x320   : > { %1124 = vsyncadd (!%p1023_p2), %s884_s19, 4294967040  ;;  %p17_p3 = scmp.ge.s32.totalorder %s1212_s30, 4   ;;  %s1375_s24 = smov %s1131_s25 }
 0x321   : > { %s1376_s25 = smov %s1135_s26  ;;  %s1377_s26 = smov %s1223_s10 }
 0x322   : > { %s1378_s27 = smov %s1212_s30  ;;  %19 = sbr.rel (!%p17_p3) target bundleno = 3 (0x3), region = 85 }
 0x329   :  { %889 = vsyncpa [#allocation5], 1 }
 0x32a   :  { %891 = vsyncpa [#allocation5 + $0x1], 1 }

</bundles_post_ra>
